<compile_context>
chip_gen: v7x
topology: tpu7x:2x2x1
jax: 0.10.0
libtpu: 0.0.40
codegen_flags: <defaults>
</compile_context>

<pallas_src>
import functools

import jax
import jax.numpy as jnp
from jax import lax
from jax.experimental import pallas as pl
from jax.experimental.pallas import tpu as pltpu


OUT_ROWS = 16  # box head (4 outputs) zero-padded to a full bf16 sublane group


def _round_up(x, m):
    return (x + m - 1) // m * m


def _choose_tiling(r):
    """Pick (tile_r, r_pad).

    16-row aligned (bf16 sublane packing); single resident tile for small R;
    >=2 grid steps for mid/large R (v7x megacore sharding) with 128-aligned
    tiles so the transposed output block stays lane-dense; capped at 512 rows
    (tile fits comfortably in VMEM on every generation, incl. v7x's 64 MiB).
    """
    r16 = _round_up(max(r, 1), 16)
    if r16 <= 256:
        tile_r = r16
    else:
        tile_r = min(512, _round_up(-(-r // 2), 128))
    return tile_r, _round_up(r, tile_r)


# ----------------------------------------------------------------------------
# Pallas kernel: x -> Linear -> ReLU -> Linear -> ReLU -> Linear(4)
# Output is stored transposed (OUT_ROWS, tile_r): lane-dense over ROIs.
# ----------------------------------------------------------------------------
def fc_head_kernel(x_ref, w1_ref, b1_ref, w2_ref, b2_ref, w3t_ref, b3t_ref,
                   out_ref):
    # x / w1 / w2 / w3t are bf16 (MXU-friendly); biases, accumulation and ReLU
    # stay f32.
    h1 = jnp.dot(x_ref[...], w1_ref[...], preferred_element_type=jnp.float32)
    h1 = jnp.maximum(h1 + b1_ref[...], 0.0)                       # ReLU (f32)

    h2 = jnp.dot(h1.astype(jnp.bfloat16), w2_ref[...],
                 preferred_element_type=jnp.float32)
    h2 = jnp.maximum(h2 + b2_ref[...], 0.0)                       # ReLU (f32)

    # Box head, transposed: (OUT_ROWS, fc) x (tile_r, fc) contracted on fc
    # -> (OUT_ROWS, tile_r).  Same NT dot_general form as the reference
    # flash-attention kernels; keeps the f32 writeback at 64 B/ROI.
    bbox_t = lax.dot_general(
        w3t_ref[...], h2.astype(jnp.bfloat16),
        dimension_numbers=(((1,), (1,)), ((), ())),
        preferred_element_type=jnp.float32)
    out_ref[...] = (bbox_t + b3t_ref[...]).astype(out_ref.dtype)


def fc_head(x_flat, w1, b1, w2, b2, w3, b3, *, tile_r):
    """x_flat: (R, in_chns) bf16 with R a multiple of tile_r. Returns (R, 4) f32."""
    r_pad, in_chns = x_flat.shape
    fc = w1.shape[1]
    assert fc % 128 == 0, "fc_channels must be a multiple of 128"
    assert r_pad % tile_r == 0

    # Pad the reduction (feature) dim to a lane multiple for clean MXU K.
    in_pad = _round_up(in_chns, 128)
    if in_pad != in_chns:
        x_flat = jnp.pad(x_flat, ((0, 0), (0, in_pad - in_chns)))
        w1 = jnp.pad(w1, ((0, in_pad - in_chns), (0, 0)))

    # Box head transposed & zero-padded 4 -> OUT_ROWS rows.
    w3t = jnp.pad(w3.T, ((0, OUT_ROWS - w3.shape[1]), (0, 0)))          # (16, fc)
    b3t = jnp.pad(b3.reshape(-1, 1), ((0, OUT_ROWS - b3.size), (0, 0)))  # (16, 1)

    # bf16 inputs to the MXU; biases stay f32.
    w1_bf = w1.astype(jnp.bfloat16)
    w2_bf = w2.astype(jnp.bfloat16)
    w3t_bf = w3t.astype(jnp.bfloat16)

    grid = (r_pad // tile_r,)
    flops = 2 * r_pad * (in_pad * fc + fc * fc + fc * OUT_ROWS)
    bytes_accessed = (r_pad * in_pad * 2                            # x (bf16)
                      + (in_pad * fc + fc * fc + OUT_ROWS * fc) * 2  # weights
                      + (2 * fc + OUT_ROWS) * 4                     # biases
                      + OUT_ROWS * r_pad * 4)                        # output

    out_t = pl.pallas_call(
        fc_head_kernel,
        out_shape=jax.ShapeDtypeStruct((OUT_ROWS, r_pad), jnp.float32),
        grid=grid,
        in_specs=[
            pl.BlockSpec((tile_r, in_pad), lambda i: (i, 0)),    # x tile (streamed)
            pl.BlockSpec((in_pad, fc), lambda i: (0, 0)),        # w1 (resident)
            pl.BlockSpec((1, fc), lambda i: (0, 0)),             # b1
            pl.BlockSpec((fc, fc), lambda i: (0, 0)),            # w2 (resident)
            pl.BlockSpec((1, fc), lambda i: (0, 0)),             # b2
            pl.BlockSpec((OUT_ROWS, fc), lambda i: (0, 0)),      # w3^T (padded)
            pl.BlockSpec((OUT_ROWS, 1), lambda i: (0, 0)),       # b3^T (padded)
        ],
        out_specs=pl.BlockSpec((OUT_ROWS, tile_r), lambda i: (0, i)),
        compiler_params=pltpu.CompilerParams(
            dimension_semantics=("parallel",),
            vmem_limit_bytes=32 * 1024 * 1024),
        cost_estimate=pl.CostEstimate(
            flops=flops, transcendentals=0, bytes_accessed=bytes_accessed),
    )(x_flat, w1_bf, b1, w2_bf, b2, w3t_bf, b3t)

    return out_t[:4].T                                             # (r_pad, 4)


# ----------------------------------------------------------------------------
# Glue: bilinear ROI pooling (stand-in for DeformRoIPoolingPack).
# Gathers only the 4 bilinear corner taps per bin (not whole per-ROI feature
# maps) and emits bf16 directly so the cast fuses into the pooling fusion.
# ----------------------------------------------------------------------------
def roi_pool(x, rois, out_size, spatial_scale):
    """x: (B, C, H, W); rois: (R, 5) = (batch_idx, x1, y1, x2, y2).

    Returns (R, C*P*P) bf16, flattened C-major (matches x.view(-1, in_chns))."""
    B, C, H, W = x.shape
    P = out_size
    R = rois.shape[0]

    batch_idx = rois[:, 0].astype(jnp.int32)
    rx1 = rois[:, 1] * spatial_scale
    ry1 = rois[:, 2] * spatial_scale
    rx2 = rois[:, 3] * spatial_scale
    ry2 = rois[:, 4] * spatial_scale
    roi_w = jnp.maximum(rx2 - rx1, 1.0)
    roi_h = jnp.maximum(ry2 - ry1, 1.0)

    grid = jnp.arange(P, dtype=jnp.float32) + 0.5                  # bin centers
    sy = ry1[:, None] + grid[None, :] * (roi_h / P)[:, None]       # (R, P)
    sx = rx1[:, None] + grid[None, :] * (roi_w / P)[:, None]       # (R, P)

    y0f = jnp.clip(jnp.floor(sy), 0.0, H - 1.0)
    x0f = jnp.clip(jnp.floor(sx), 0.0, W - 1.0)
    ly = jnp.clip(sy - y0f, 0.0, 1.0)                              # (R, P)
    lx = jnp.clip(sx - x0f, 0.0, 1.0)                              # (R, P)
    y0 = y0f.astype(jnp.int32)
    x0 = x0f.astype(jnp.int32)
    y1i = jnp.minimum(y0 + 1, H - 1)
    x1i = jnp.minimum(x0 + 1, W - 1)

    # One (B,H,W,C) copy of the feature map, then gather only the corner taps.
    x_hwc = jnp.transpose(x, (0, 2, 3, 1)).reshape(B * H * W, C)
    base = batch_idx[:, None, None] * (H * W)                      # (R, 1, 1)

    def tap(yi, xi):
        idx = base + yi[:, :, None] * W + xi[:, None, :]           # (R, P, P)
        return jnp.take(x_hwc, idx, axis=0)                        # (R, P, P, C)

    f00 = tap(y0, x0)
    f01 = tap(y0, x1i)
    f10 = tap(y1i, x0)
    f11 = tap(y1i, x1i)

    wy = ly[:, :, None, None]                                      # (R, P, 1, 1)
    wx = lx[:, None, :, None]                                      # (R, 1, P, 1)
    pooled = (f00 * (1 - wy) * (1 - wx) + f01 * (1 - wy) * wx +
              f10 * wy * (1 - wx) + f11 * wy * wx)                 # (R, P, P, C)

    # C-major flatten (matches PyTorch view) and emit bf16 for the FC kernel.
    pooled = jnp.transpose(pooled, (0, 3, 1, 2)).reshape(R, C * P * P)
    return pooled.astype(jnp.bfloat16)


# ----------------------------------------------------------------------------
# Parameter construction (deterministic, in-script)
# ----------------------------------------------------------------------------
def make_params(key, in_channels, fc_channels):
    k1, k2, k3 = jax.random.split(key, 3)

    def xavier(k, fan_in, fan_out):
        bound = jnp.sqrt(6.0 / (fan_in + fan_out))
        return jax.random.uniform(k, (fan_in, fan_out), jnp.float32,
                                  -bound, bound)

    w1 = xavier(k1, in_channels, fc_channels)
    b1 = jnp.zeros((1, fc_channels), jnp.float32)
    w2 = xavier(k2, fc_channels, fc_channels)
    b2 = jnp.zeros((1, fc_channels), jnp.float32)
    # gauss_fill(std=0.001) for the box head
    w3 = 0.001 * jax.random.normal(k3, (fc_channels, 4), jnp.float32)
    b3 = jnp.zeros((1, 4), jnp.float32)
    return w1, b1, w2, b2, w3, b3


@functools.partial(jax.jit, static_argnames=("out_size", "spatial_scale"))
def fcx2_det_head_forward(x, rois, params, *, out_size, spatial_scale):
    w1, b1, w2, b2, w3, b3 = params
    r = rois.shape[0]
    tile_r, r_pad = _choose_tiling(r)
    if r_pad != r:
        # Pad the cheap (R, 5) ROI list instead of re-copying the pooled
        # activations later; dummy-ROI outputs are sliced off below.
        rois = jnp.pad(rois, ((0, r_pad - r), (0, 0)))
    x_flat = roi_pool(x, rois, out_size, spatial_scale)     # (r_pad, C*P*P) bf16
    bbox = fc_head(x_flat, w1, b1, w2, b2, w3, b3, tile_r=tile_r)   # (r_pad, 4)
    return bbox[:r]


# ----------------------------------------------------------------------------
# Pure-JAX reference for the FC head (same bf16 inputs, f32 accumulation)
# ----------------------------------------------------------------------------
def fc_head_reference(x_flat, w1, b1, w2, b2, w3, b3):
    bf = lambda a: a.astype(jnp.bfloat16)
    h1 = jnp.maximum(
        jnp.dot(bf(x_flat), bf(w1), preferred_element_type=jnp.float32) + b1, 0.0)
    h2 = jnp.maximum(
        jnp.dot(bf(h1), bf(w2), preferred_element_type=jnp.float32) + b2, 0.0)
    return jnp.dot(bf(h2), bf(w3), preferred_element_type=jnp.float32) + b3


# ----------------------------------------------------------------------------
if __name__ == "__main__":
    key = jax.random.PRNGKey(0)
    k_x, k_roi, k_p = jax.random.split(key, 3)

    # Small synthetic config (consistent with the module structure):
    B, C, H, W = 2, 16, 16, 16          # feature map, NCHW
    OUT_SIZE = 4                        # ROIPOOL_OUTSIZE // 4
    SPATIAL_SCALE = 25.0 / 255.0        # 1 / (SEARCH_SIZE / 25)
    IN_CHANNELS = C * OUT_SIZE * OUT_SIZE   # 256 = what x.view(-1, in_chns) implies
    FC_CHANNELS = 128
    NUM_ROIS = 8

    x = jax.random.normal(k_x, (B, C, H, W), jnp.float32)

    # rois: (batch_idx, x1, y1, x2, y2) in input-image coordinates
    batch_ids = jnp.arange(NUM_ROIS, dtype=jnp.float32) % B
    xy1 = jax.random.uniform(k_roi, (NUM_ROIS, 2), jnp.float32, 0.0, 100.0)
    wh = jax.random.uniform(jax.random.fold_in(k_roi, 1), (NUM_ROIS, 2),
                            jnp.float32, 20.0, 120.0)
    rois = jnp.concatenate([batch_ids[:, None], xy1, xy1 + wh], axis=1)

    params = make_params(k_p, IN_CHANNELS, FC_CHANNELS)

    bbox_pred = fcx2_det_head_forward(
        x, rois, params, out_size=OUT_SIZE, spatial_scale=SPATIAL_SCALE)
    jax.block_until_ready(bbox_pred)
    assert bbox_pred.shape == (NUM_ROIS, 4)

    # Correctness check of the Pallas FC head against a pure-JAX reference.
    x_flat = roi_pool(x, rois, OUT_SIZE, SPATIAL_SCALE)     # (NUM_ROIS, in_chns)
    ref = fc_head_reference(x_flat, *params)
    err = jnp.max(jnp.abs(bbox_pred - ref))
    assert bool(err < 1e-3), f"mismatch vs reference, max abs err = {err}"

    print("KERNEL_OK")
</pallas_src>

<mosaic_0001>
module attributes {stable_mosaic.version = 11 : i64} {
  func.func @fc_head_kernel(%arg0: i32, %arg1: memref<16x256xbf16, #tpu.memory_space<vmem>>, %arg2: memref<256x128xbf16, #tpu.memory_space<vmem>>, %arg3: memref<1x128xf32, #tpu.memory_space<vmem>>, %arg4: memref<128x128xbf16, #tpu.memory_space<vmem>>, %arg5: memref<1x128xf32, #tpu.memory_space<vmem>>, %arg6: memref<16x128xbf16, #tpu.memory_space<vmem>>, %arg7: memref<16x1xf32, #tpu.memory_space<vmem>>, %arg8: memref<16x16xf32, #tpu.memory_space<vmem>>) attributes {dimension_semantics = [#tpu.dimension_semantics<parallel>], iteration_bounds = array<i64: 1>, scalar_prefetch = 0 : i64, scratch_operands = 0 : i64, tpu.core_type = #tpu.core_type<tc>, window_params = [{transform_indices = @transform_0, window_bounds = array<i64: 16, 256>}, {pipeline_mode = #tpu.pipeline_mode<synchronous>, transform_indices = @transform_1, window_bounds = array<i64: 256, 128>}, {pipeline_mode = #tpu.pipeline_mode<synchronous>, transform_indices = @transform_2, window_bounds = array<i64: 1, 128>}, {pipeline_mode = #tpu.pipeline_mode<synchronous>, transform_indices = @transform_3, window_bounds = array<i64: 128, 128>}, {pipeline_mode = #tpu.pipeline_mode<synchronous>, transform_indices = @transform_4, window_bounds = array<i64: 1, 128>}, {pipeline_mode = #tpu.pipeline_mode<synchronous>, transform_indices = @transform_5, window_bounds = array<i64: 16, 128>}, {pipeline_mode = #tpu.pipeline_mode<synchronous>, transform_indices = @transform_6, window_bounds = array<i64: 16, 1>}, {transform_indices = @transform_7, window_bounds = array<i64: 16, 16>}]} {
    %c0 = arith.constant 0 : index
    %c0_0 = arith.constant 0 : index
    %0 = vector.load %arg1[%c0, %c0_0] : memref<16x256xbf16, #tpu.memory_space<vmem>>, vector<16x256xbf16>
    %c0_1 = arith.constant 0 : index
    %c0_2 = arith.constant 0 : index
    %1 = vector.load %arg2[%c0_1, %c0_2] : memref<256x128xbf16, #tpu.memory_space<vmem>>, vector<256x128xbf16>
    %cst = arith.constant dense<0.000000e+00> : vector<16x128xf32>
    %2 = tpu.matmul %0, %1, %cst {dimension_numbers = #tpu.dot_dimension_numbers<[1], [0], [0], [1], [0, 0, 1, 1], [], []>} : vector<16x256xbf16>, vector<256x128xbf16>, vector<16x128xf32> -> vector<16x128xf32>
    %c0_3 = arith.constant 0 : index
    %c0_4 = arith.constant 0 : index
    %3 = vector.load %arg3[%c0_3, %c0_4] : memref<1x128xf32, #tpu.memory_space<vmem>>, vector<1x128xf32>
    %4 = vector.broadcast %3 : vector<1x128xf32> to vector<16x128xf32>
    %5 = arith.addf %2, %4 : vector<16x128xf32>
    %cst_5 = arith.constant 0.000000e+00 : f32
    %6 = vector.broadcast %cst_5 : f32 to vector<16x128xf32>
    %7 = arith.maximumf %5, %6 : vector<16x128xf32>
    %8 = arith.truncf %7 : vector<16x128xf32> to vector<16x128xbf16>
    %c0_6 = arith.constant 0 : index
    %c0_7 = arith.constant 0 : index
    %9 = vector.load %arg4[%c0_6, %c0_7] : memref<128x128xbf16, #tpu.memory_space<vmem>>, vector<128x128xbf16>
    %cst_8 = arith.constant dense<0.000000e+00> : vector<16x128xf32>
    %10 = tpu.matmul %8, %9, %cst_8 {dimension_numbers = #tpu.dot_dimension_numbers<[1], [0], [0], [1], [0, 0, 1, 1], [], []>} : vector<16x128xbf16>, vector<128x128xbf16>, vector<16x128xf32> -> vector<16x128xf32>
    %c0_9 = arith.constant 0 : index
    %c0_10 = arith.constant 0 : index
    %11 = vector.load %arg5[%c0_9, %c0_10] : memref<1x128xf32, #tpu.memory_space<vmem>>, vector<1x128xf32>
    %12 = vector.broadcast %11 : vector<1x128xf32> to vector<16x128xf32>
    %13 = arith.addf %10, %12 : vector<16x128xf32>
    %cst_11 = arith.constant 0.000000e+00 : f32
    %14 = vector.broadcast %cst_11 : f32 to vector<16x128xf32>
    %15 = arith.maximumf %13, %14 : vector<16x128xf32>
    %c0_12 = arith.constant 0 : index
    %c0_13 = arith.constant 0 : index
    %16 = vector.load %arg6[%c0_12, %c0_13] : memref<16x128xbf16, #tpu.memory_space<vmem>>, vector<16x128xbf16>
    %17 = arith.truncf %15 : vector<16x128xf32> to vector<16x128xbf16>
    %cst_14 = arith.constant dense<0.000000e+00> : vector<16x16xf32>
    %18 = tpu.matmul %16, %17, %cst_14 {dimension_numbers = #tpu.dot_dimension_numbers<[1], [1], [0], [0], [0, 0, 1, 0], [], []>} : vector<16x128xbf16>, vector<16x128xbf16>, vector<16x16xf32> -> vector<16x16xf32>
    %c0_15 = arith.constant 0 : index
    %c0_16 = arith.constant 0 : index
    %19 = vector.load %arg7[%c0_15, %c0_16] : memref<16x1xf32, #tpu.memory_space<vmem>>, vector<16x1xf32>
    %20 = vector.broadcast %19 : vector<16x1xf32> to vector<16x16xf32>
    %21 = arith.addf %18, %20 : vector<16x16xf32>
    %c0_17 = arith.constant 0 : index
    %c0_18 = arith.constant 0 : index
    %22 = vector.load %arg8[%c0_17, %c0_18] : memref<16x16xf32, #tpu.memory_space<vmem>>, vector<16x16xf32>
    tpu.vector_store %arg8[%c0_17, %c0_18], %21 {strides = array<i32>} : memref<16x16xf32, #tpu.memory_space<vmem>>, vector<16x16xf32>,
    return
  }
  func.func @transform_0(%arg0: i32) -> (i32, i32) {
    %c0_i32 = arith.constant 0 : i32
    %c0_i32_0 = arith.constant 0 : i32
    return %arg0, %c0_i32 : i32, i32
  }
  func.func @transform_1(%arg0: i32) -> (i32, i32) {
    %c0_i32 = arith.constant 0 : i32
    %c0_i32_0 = arith.constant 0 : i32
    %c0_i32_1 = arith.constant 0 : i32
    return %c0_i32, %c0_i32_0 : i32, i32
  }
  func.func @transform_2(%arg0: i32) -> (i32, i32) {
    %c0_i32 = arith.constant 0 : i32
    %c0_i32_0 = arith.constant 0 : i32
    %c0_i32_1 = arith.constant 0 : i32
    return %c0_i32, %c0_i32_0 : i32, i32
  }
  func.func @transform_3(%arg0: i32) -> (i32, i32) {
    %c0_i32 = arith.constant 0 : i32
    %c0_i32_0 = arith.constant 0 : i32
    %c0_i32_1 = arith.constant 0 : i32
    return %c0_i32, %c0_i32_0 : i32, i32
  }
  func.func @transform_4(%arg0: i32) -> (i32, i32) {
    %c0_i32 = arith.constant 0 : i32
    %c0_i32_0 = arith.constant 0 : i32
    %c0_i32_1 = arith.constant 0 : i32
    return %c0_i32, %c0_i32_0 : i32, i32
  }
  func.func @transform_5(%arg0: i32) -> (i32, i32) {
    %c0_i32 = arith.constant 0 : i32
    %c0_i32_0 = arith.constant 0 : i32
    %c0_i32_1 = arith.constant 0 : i32
    return %c0_i32, %c0_i32_0 : i32, i32
  }
  func.func @transform_6(%arg0: i32) -> (i32, i32) {
    %c0_i32 = arith.constant 0 : i32
    %c0_i32_0 = arith.constant 0 : i32
    %c0_i32_1 = arith.constant 0 : i32
    return %c0_i32, %c0_i32_0 : i32, i32
  }
  func.func @transform_7(%arg0: i32) -> (i32, i32) {
    %c0_i32 = arith.constant 0 : i32
    %c0_i32_0 = arith.constant 0 : i32
    return %c0_i32, %arg0 : i32, i32
  }
}

</mosaic_0001>

<bundles_post_ra>
// kernel: fcx2_det_head_forward.1
= control target key start
LH: loop header
LB: loop body
LE: loop exit
PB: predicated region body
PF: predicated region fallthrough
CT: control target
= control target key end

     0   :  { %v521_v1 = vmov 0.0   ;;  %vm522_vm0 = vmmov 0   ;;  %v523_v39 = vmov 0   ;;  %vm394_vm1 = vcmask 130048   ;;  %s674_s1 = inlined_call_operand.vmem [shape: bf16[256,128], index: 1, kind: input, shape index: {}]   ;;  %s675_s0 = inlined_call_operand.vmem [shape: bf16[16,256], index: 0, kind: input, shape index: {}]   ;;  %s676_s3 = inlined_call_operand.vmem [shape: bf16[128,128], index: 3, kind: input, shape index: {}]   ;;  %s677_s2 = inlined_call_operand.vmem [shape: f32[1,128], index: 2, kind: input, shape index: {}]   ;;  %s678_s5 = inlined_call_operand.vmem [shape: bf16[16,128], index: 5, kind: input, shape index: {}]   ;;  %s679_s6 = inlined_call_operand.vmem [shape: f32[16,1], index: 6, kind: input, shape index: {}]   ;;  %s680_s4 = inlined_call_operand.vmem [shape: f32[1,128], index: 4, kind: input, shape index: {}]   ;;  %s681_s7 = inlined_call_operand.vmem [shape: f32[16,16], index: 7, kind: output, shape index: {}]  }
   0x1   :  { %v493_v0 = vld [vmem:[%s674_s1 + $0x40] sm:$0xff]   ;;  %463 = vmatprep.subr.bf16.mxu1 %v521_v1  ;;  %v495_v3 = vld [vmem:[%s674_s1 + $0x48] sm:$0xff]   ;;  %v497_v5 = vld [vmem:[%s674_s1 + $0x50] sm:$0xff]   ;;  %479 = vmatprep.mubr.msk.bf16.mxu1 %vm522_vm0, %v521_v1 }
   0x2   :  { %v494_v2 = vld [vmem:[%s674_s1] sm:$0xff]   ;;  %430 = vmatprep.subr.bf16.mxu0 %v493_v0  ;;  %v496_v4 = vld [vmem:[%s674_s1 + $0x8] sm:$0xff]   ;;  %v498_v6 = vld [vmem:[%s674_s1 + $0x10] sm:$0xff]   ;;  %492 = vset.pattern.permute.xlu0 %v523_v39 }
   0x3   :  { %431 = vmatpush3.bf16.msra.mxu0 %v494_v2  ;;  %v499_v7 = vld [vmem:[%s674_s1 + $0x58] sm:$0xff]   ;;  %v501_v9 = vld [vmem:[%s674_s1 + $0x60] sm:$0xff]   ;;  %v503_v11 = vld [vmem:[%s674_s1 + $0x68] sm:$0xff]  }
   0x4   :  { %432 = vmatprep.subr.bf16.mxu0 %v495_v3  ;;  %v500_v8 = vld [vmem:[%s674_s1 + $0x18] sm:$0xff]   ;;  %v502_v10 = vld [vmem:[%s674_s1 + $0x20] sm:$0xff]   ;;  %v504_v12 = vld [vmem:[%s674_s1 + $0x28] sm:$0xff]  }
   0x5   :  { %v511_v13 = vld [vmem:[%s675_s0 + $0x4] ss:$8 sps:$4 sm:$0xff]   ;;  %v505_v15 = vld [vmem:[%s674_s1 + $0x70] sm:$0xff]   ;;  %v507_v18 = vld [vmem:[%s674_s1 + $0x78] sm:$0xff]  }
   0x6   :  { %v512_v14 = vld [vmem:[%s676_s3] sm:$0xff]   ;;  %206 = vmatprep.mubr.bf16.mxu0 %v511_v13  ;;  %v513_v16 = vld [vmem:[%s676_s3 + $0x8] sm:$0xff]   ;;  %v506_v17 = vld [vmem:[%s674_s1 + $0x30] sm:$0xff]  }
   0x7   :  { %433 = vmatpush3.bf16.msra.mxu0 %v496_v4  ;;  %464 = vmatpush3.bf16.msra.mxu1 %v512_v14  ;;  %v514_v19 = vld [vmem:[%s676_s3 + $0x10] sm:$0xff]   ;;  %v508_v20 = vld [vmem:[%s674_s1 + $0x38] sm:$0xff]   ;;  %v509_v22 = vld [vmem:[%s675_s0] ss:$8 sps:$4 sm:$0xff]  }
   0x8   :  { %434 = vmatprep.subr.bf16.mxu0 %v497_v5  ;;  %465 = vmatprep.subr.bf16.mxu1 %v521_v1  ;;  %v515_v21 = vld [vmem:[%s676_s3 + $0x18] sm:$0xff]   ;;  %v516_v23 = vld [vmem:[%s676_s3 + $0x20] sm:$0xff]   ;;  %v517_v24 = vld [vmem:[%s676_s3 + $0x28] sm:$0xff]  }
   0x9   :  { %v518_v25 = vld [vmem:[%s676_s3 + $0x30] sm:$0xff]   ;;  %v519_v26 = vld [vmem:[%s676_s3 + $0x38] sm:$0xff]   ;;  %v401_v28 = vld [vmem:[%s677_s2] ss:$0 sm:$0xff] }
   0xa   :  { %v335_v40 = vld [vmem:[%s679_s6] sm:$0xff]  ;;  %v336_v41 = vld [vmem:[%s679_s6 + $0x8] sm:$0xff] }
   0xb   :  { %435 = vmatpush3.bf16.msra.mxu0 %v498_v6  ;;  %466 = vmatpush3.bf16.msra.mxu1 %v513_v16  ;;  %v420_v42 = vld [vmem:[%s680_s4] ss:$0 sm:$0xff] }
   0xc   :  { %436 = vmatprep.subr.bf16.mxu0 %v499_v7  ;;  %467 = vmatprep.subr.bf16.mxu1 %v521_v1  ;;  %v520_v52 = vld [vmem:[%s678_s5] sm:$0xff]  }
   0xd   :  { %339 = vperm.xlu0 %492, %v335_v40  }
   0xf   :  { %437 = vmatpush3.bf16.msra.mxu0 %v500_v8  ;;  %468 = vmatpush3.bf16.msra.mxu1 %v514_v19 }
  0x10   :  { %438 = vmatprep.subr.bf16.mxu0 %v501_v9  ;;  %469 = vmatprep.subr.bf16.mxu1 %v521_v1 }
  0x11   :  { %344 = vperm.xlu0 %492, %v336_v41  }
  0x13   :  { %439 = vmatpush3.bf16.msra.mxu0 %v502_v10  ;;  %470 = vmatpush3.bf16.msra.mxu1 %v515_v21 }
  0x14   :  { %440 = vmatprep.subr.bf16.mxu0 %v503_v11  ;;  %471 = vmatprep.subr.bf16.mxu1 %v521_v1 }
  0x17   :  { %441 = vmatpush3.bf16.msra.mxu0 %v504_v12  ;;  %472 = vmatpush3.bf16.msra.mxu1 %v516_v23 }
  0x18   :  { %442 = vmatprep.subr.bf16.mxu0 %v505_v15  ;;  %473 = vmatprep.subr.bf16.mxu1 %v521_v1 }
  0x1b   :  { %443 = vmatpush3.bf16.msra.mxu0 %v506_v17  ;;  %474 = vmatpush3.bf16.msra.mxu1 %v517_v24 }
  0x1c   :  { %444 = vmatprep.subr.bf16.mxu0 %v507_v18  ;;  %475 = vmatprep.subr.bf16.mxu1 %v521_v1 }
  0x1f   :  { %445 = vmatpush3.bf16.msra.mxu0 %v508_v20  ;;  %476 = vmatpush3.bf16.msra.mxu1 %v518_v25 }
  0x20   :  { %483 = vmatprep.subr.bf16.mxu0 %v521_v1  ;;  %477 = vmatprep.subr.bf16.mxu1 %v521_v1 }
  0x22   :  { %207 = vmatmul.mubr.bf16.vlgmr.msra.gmra.mrb[0].mxu0 %v509_v22 }
  0x23   :  { %478 = vmatpush3.bf16.msra.mxu1 %v519_v26  ;;  %485 = vmatprep.mubr.msk.bf16.mxu0 %vm522_vm0, %v521_v1 }
  0x8c   :  { %v340_v53 = vpop.permute.xlu0 %339 }
  0x90   :  { %v345_v57 = vpop.permute.xlu0 %344 }
  0xf5   :  { %v446_v27 = vpop.f32.mrb[0].mxu0 }
  0xf6   :  { %v447_v29 = vpop.f32.mrb[1].mxu0 }
  0xf7   :  { %v448_v30 = vadd.f32 %v447_v29, %v446_v27  ;;  %v449_v31 = vpop.f32.mrb[2].mxu0 }
  0xf8   :  { %v450_v32 = vpop.f32.mrb[3].mxu0 }
  0xf9   :  { %v209_v33 = vadd.f32 %v448_v30, %v401_v28  ;;  %v451_v34 = vadd.f32 %v450_v32, %v449_v31 }
  0xfb   :  { %v212_v35 = vadd.f32 %v451_v34, %v401_v28  ;;  %v215_v36 = vmax.f32 %v209_v33, 0.0 }
  0xfd   :  { %v216_v37 = vmax.f32 %v212_v35, 0.0 }
  0xff   :  { %v217_v38 = vpack.c.bf16 %v216_v37, %v215_v36 }
 0x101   :  { %480 = vmatmul.mubr.bf16.vlgmr.msra.gmra.mrb[0].mxu1 %v217_v38 }
 0x1d4   :  { %v323_v43 = vpop.f32.mrb[0].mxu1 }
 0x1d5   :  { %v324_v44 = vadd.f32 %v420_v42, %v323_v43  ;;  %v481_v45 = vpop.f32.mrb[1].mxu1 }
 0x1d6   :  { %v326_v46 = vpop.f32.mrb[2].mxu1 }
 0x1d7   :  { %v327_v47 = vadd.f32 %v420_v42, %v326_v46  ;;  %v482_v48 = vpop.f32.mrb[3].mxu1  ;;  %v330_v49 = vmax.f32 %v324_v44, 0.0 }
 0x1d9   :  { %v331_v50 = vmax.f32 %v327_v47, 0.0 }
 0x1db   :  { %v334_v51 = vpack.c.bf16 %v331_v50, %v330_v49 }
 0x1dd   :  { %484 = vmatpush3.bf16.xpose.msra.mxu0 %v334_v51 }
 0x1e4   :  { %486 = vmatmul.mubr.bf16.vlgmr.msra.gmra.mrb[4].mxu0 %v520_v52 }
 0x2b7   :  { %v387_v54 = vpop.f32.mrb[4].mxu0 }
 0x2b8   :  { %v388_v55 = vadd.f32 %v387_v54, %v340_v53  ;;  %v487_v56 = vpop.f32.mrb[5].mxu0 }
 0x2b9   :  { %v390_v58 = vpop.f32.mrb[6].mxu0 }
 0x2ba   :  { %395 = vst.msk [vmem:[%s681_s7] sm:$0xff] %vm394_vm1, %v388_v55  ;;  %v391_v59 = vadd.f32 %v390_v58, %v345_v57  ;;  %v488_v60 = vpop.f32.mrb[7].mxu0 }
 0x2bc   :  { %396 = vst.msk [vmem:[%s681_s7 + $0x8] sm:$0xff] %vm394_vm1, %v391_v59 }

</bundles_post_ra>
